<compile_context>
chip_gen: v7x
topology: tpu7x:2x2x1
jax: 0.10.0
libtpu: 0.0.40
codegen_flags: <defaults>
</compile_context>

<pallas_src>
import functools

import jax
import jax.numpy as jnp
from jax.experimental import pallas as pl
from jax.experimental.pallas import tpu as pltpu

_LANE = 128
_BLOCK_ROWS = 8192            # f32: 4 MiB tile; (in+out) x double-buffer = 16 MiB
_SPLIT_MIN_ROWS = 2048        # >= ~1 MiB (f32) per tile before forcing a 2-way split
_WHOLE_BLOCK_BUDGET = 4 * 1024 * 1024   # padded-bytes cap for the single-block ragged path
_VMEM_LIMIT = 32 * 1024 * 1024


def _softclip_kernel(x_ref, o_ref, *, low):
    # Memory-bound elementwise: compute in f32, cast only on store.
    # sigmoid(x) = 0.5*(1 + tanh(x/2))  =>  y = 0.5 + (0.5 - low)*tanh(0.5*x)
    # -> exactly one EUP transcendental per element; add/mul go to the VALU.
    x = x_ref[...].astype(jnp.float32)
    y = 0.5 + (0.5 - low) * jnp.tanh(0.5 * x)
    o_ref[...] = y.astype(o_ref.dtype)


def _round_up(x, m):
    return ((x + m - 1) // m) * m


def _softclip_slab(x2d, low):
    """Tiled path over a lane-dense [rows, 128] slab."""
    rows = x2d.shape[0]
    dtype = x2d.dtype

    if rows <= _BLOCK_ROWS:
        if rows >= 2 * _SPLIT_MIN_ROWS:
            # v7x has 2 TensorCores: give each one block, but only when each
            # tile stays >= ~1 MiB.  On 1-TC v5e/v6e the one extra grid step
            # costs ~0.35 us (noise).  Multiple of 16 keeps bf16 sublane
            # packing unmasked.
            tile_rows = _round_up(pl.cdiv(rows, 2), 16)
        else:
            tile_rows = rows          # single full-dim block (no 8-multiple needed)
    else:
        tile_rows = _BLOCK_ROWS       # multiple of 16

    grid = (pl.cdiv(rows, tile_rows),)   # partial last block: masked writes, safe

    kernel = functools.partial(_softclip_kernel, low=low)
    return pl.pallas_call(
        kernel,
        out_shape=jax.ShapeDtypeStruct((rows, _LANE), dtype),
        grid_spec=pltpu.PrefetchScalarGridSpec(
            num_scalar_prefetch=0,
            grid=grid,
            in_specs=[pl.BlockSpec((tile_rows, _LANE), lambda i: (i, 0))],
            out_specs=pl.BlockSpec((tile_rows, _LANE), lambda i: (i, 0)),
        ),
        compiler_params=pltpu.CompilerParams(
            dimension_semantics=("parallel",),
            # Needed for 8192-row f32 tiles on v5e (default scoped VMEM is 16 MiB);
            # fits physical VMEM on v5e/v6e (128 MiB) and v7x (64 MiB).
            vmem_limit_bytes=_VMEM_LIMIT,
        ),
    )(x2d)


def _softclip_whole(x2d, low):
    """Single-block path: whole (small) unaligned array resident in VMEM."""
    kernel = functools.partial(_softclip_kernel, low=low)
    return pl.pallas_call(
        kernel,
        out_shape=jax.ShapeDtypeStruct(x2d.shape, x2d.dtype),
        in_specs=[pl.BlockSpec(memory_space=pltpu.MemorySpace.VMEM)],
        out_specs=pl.BlockSpec(memory_space=pltpu.MemorySpace.VMEM),
    )(x2d)


def soft_clip(x, low=1e-6):
    """Pallas TPU implementation of SoftClip.forward: low + (1-2*low)*sigmoid(x)."""
    low = float(low)
    orig_shape = x.shape
    n = x.size
    if n == 0:
        return x

    if n % _LANE == 0:
        # Fast path: contiguous reshape (no HBM pass) to [rows, 128].
        rows = n // _LANE
        out = _softclip_slab(x.reshape(rows, _LANE), low)
        return out.reshape(orig_shape)

    # Ragged (n % 128 != 0): collapse to 2-D on the trailing dim.  If the
    # internally-padded VMEM footprint is small, run the whole array as one
    # block -- no jnp.pad, no trailing slice, so no extra HBM passes.
    if x.ndim >= 2:
        x2d = x.reshape(-1, orig_shape[-1])
    else:
        x2d = x.reshape(1, -1)
    r, c = x2d.shape
    padded_bytes = _round_up(r, 8) * _round_up(c, _LANE) * x.dtype.itemsize
    if padded_bytes <= _WHOLE_BLOCK_BUDGET:
        return _softclip_whole(x2d, low).reshape(orig_shape)

    # Large & ragged fallback: one pad (to a 128-multiple only) + one slice.
    # TODO(synk): replace with manual-DMA tail handling (pl.ANY input) to drop
    # these two extra HBM passes on huge unaligned inputs.
    padded_n = _round_up(n, _LANE)
    x_flat = jnp.pad(x.reshape(-1), (0, padded_n - n))
    out = _softclip_slab(x_flat.reshape(padded_n // _LANE, _LANE), low)
    return out.reshape(-1)[:n].reshape(orig_shape)


if __name__ == "__main__":
    low = 1e-6

    # Aligned path (n % 128 == 0): small NCHW-style input.
    x = jax.random.normal(jax.random.PRNGKey(0), (2, 4, 16, 16), dtype=jnp.float32) * 3.0
    y = jax.block_until_ready(soft_clip(x, low=low))
    y_ref = low + (1.0 - 2.0 * low) * jax.nn.sigmoid(x)
    assert y.shape == x.shape and y.dtype == x.dtype
    assert jnp.allclose(y, y_ref, atol=1e-5, rtol=1e-5)

    # Ragged path (n % 128 != 0): whole-array single-block kernel, no pad/slice.
    x2 = jax.random.normal(jax.random.PRNGKey(1), (2, 5, 2531), dtype=jnp.float32)
    y2 = jax.block_until_ready(soft_clip(x2, low=low))
    y2_ref = low + (1.0 - 2.0 * low) * jax.nn.sigmoid(x2)
    assert y2.shape == x2.shape and y2.dtype == x2.dtype
    assert jnp.allclose(y2, y2_ref, atol=1e-5, rtol=1e-5)

    # bf16 I/O: kernel computes in f32, casts on store.
    xb = (jax.random.normal(jax.random.PRNGKey(2), (2, 4, 16, 16)) * 3.0
          ).astype(jnp.bfloat16)
    yb = jax.block_until_ready(soft_clip(xb, low=low))
    yb_ref = (low + (1.0 - 2.0 * low)
              * jax.nn.sigmoid(xb.astype(jnp.float32))).astype(jnp.bfloat16)
    assert yb.shape == xb.shape and yb.dtype == jnp.bfloat16
    assert jnp.allclose(yb.astype(jnp.float32), yb_ref.astype(jnp.float32),
                        atol=2e-2, rtol=2e-2)

    # Medium aligned input exercising the 2-step tiled grid (rows = 4096).
    x3 = jax.random.normal(jax.random.PRNGKey(3), (4, 8, 128, 128), dtype=jnp.float32)
    y3 = jax.block_until_ready(soft_clip(x3, low=low))
    y3_ref = low + (1.0 - 2.0 * low) * jax.nn.sigmoid(x3)
    assert jnp.allclose(y3, y3_ref, atol=1e-5, rtol=1e-5)

    print("KERNEL_OK")
</pallas_src>

<mosaic_0001>
module attributes {stable_mosaic.version = 11 : i64} {
  func.func @_softclip_kernel(%arg0: i32, %arg1: memref<16x128xf32, #tpu.memory_space<vmem>>, %arg2: memref<16x128xf32, #tpu.memory_space<vmem>>) attributes {dimension_semantics = [#tpu.dimension_semantics<parallel>], iteration_bounds = array<i64: 1>, scalar_prefetch = 0 : i64, scratch_operands = 0 : i64, tpu.core_type = #tpu.core_type<tc>, window_params = [{transform_indices = @transform_0, window_bounds = array<i64: 16, 128>}, {transform_indices = @transform_1, window_bounds = array<i64: 16, 128>}]} {
    %c0 = arith.constant 0 : index
    %c0_0 = arith.constant 0 : index
    %0 = vector.load %arg1[%c0, %c0_0] : memref<16x128xf32, #tpu.memory_space<vmem>>, vector<16x128xf32>
    %cst = arith.constant 5.000000e-01 : f32
    %1 = vector.broadcast %cst : f32 to vector<16x128xf32>
    %2 = arith.mulf %1, %0 : vector<16x128xf32>
    %3 = math.tanh %2 : vector<16x128xf32>
    %cst_1 = arith.constant 4.999990e-01 : f32
    %4 = vector.broadcast %cst_1 : f32 to vector<16x128xf32>
    %5 = arith.mulf %4, %3 : vector<16x128xf32>
    %cst_2 = arith.constant 5.000000e-01 : f32
    %6 = vector.broadcast %cst_2 : f32 to vector<16x128xf32>
    %7 = arith.addf %6, %5 : vector<16x128xf32>
    %c0_3 = arith.constant 0 : index
    %c0_4 = arith.constant 0 : index
    %8 = vector.load %arg2[%c0_3, %c0_4] : memref<16x128xf32, #tpu.memory_space<vmem>>, vector<16x128xf32>
    tpu.vector_store %arg2[%c0_3, %c0_4], %7 {strides = array<i32>} : memref<16x128xf32, #tpu.memory_space<vmem>>, vector<16x128xf32>,
    return
  }
  func.func @transform_0(%arg0: i32) -> (i32, i32) {
    %c0_i32 = arith.constant 0 : i32
    %c0_i32_0 = arith.constant 0 : i32
    return %arg0, %c0_i32 : i32, i32
  }
  func.func @transform_1(%arg0: i32) -> (i32, i32) {
    %c0_i32 = arith.constant 0 : i32
    %c0_i32_0 = arith.constant 0 : i32
    return %arg0, %c0_i32 : i32, i32
  }
}

</mosaic_0001>

<bundles_post_ra>
// kernel: tpu_custom_call.1
= control target key start
LH: loop header
LB: loop body
LE: loop exit
PB: predicated region body
PF: predicated region fallthrough
CT: control target
= control target key end

     0   :  { %6 = vsyncpa [#allocation3], 0  ;;  %s152_s0 = inlined_call_operand.hbm [shape: f32[16,128], index: 0, kind: input, shape index: {}]   ;;  %s153_s1 = inlined_call_operand.hbm [shape: f32[16,128], index: 1, kind: output, shape index: {}]  }
   0x1   :  { %7 = vsyncpa [#allocation4], 0  ;;  %s108_s6 = smov [#allocation2]   ;;  %s60_s10 = scalar_lea.hbm %s152_s0, 256 }
   0x2   :  { %s13_s7 = sshll.u32 %s108_s6, 4  ;;  %p61_p0 = scmp.ne.s32.totalorder %s152_s0, %s60_s10  ;;  %s14_s7 = int_to_ptr.vmem [resolvable:$true] %s13_s7 }
   0x3   :  { %p64_p1 = scmp.lt.u32.totalorder %s60_s10, %s152_s0 }
   0x5   :  { %p66_p2 = pnand %p64_p1, %p61_p0 }
   0x7   :  { %69 = shalt.err (!%p66_p2)
}
   0x8   :  { %s70_s15 = scalar_lea.vmem %s14_s7, 256  ;;  %p75_p4 = scmp.lt.s32.totalorder %s14_s7, %s14_s7 }
   0x9   :  { %p71_p3 = scmp.ne.s32.totalorder %s14_s7, %s70_s15  ;;  %p76_p5 = scmp.lt.s32.totalorder %s70_s15, %s70_s15 }
   0xb   :  { %p77_p6 = por %p76_p5, %p75_p4 }
   0xd   :  { %p78_p7 = pnand %p77_p6, %p71_p3 }
   0xf   :  { %81 = shalt.err (!%p78_p7)
}
  0x10   :  { %s109_s16 = smov 128   ;;  %s110_s17 = smov 8  }
  0x11   :  { %19 = dma.hbm_to_vmem [thread:$0]  %s152_s0, 256, %s14_s7, [#allocation3], %s109_s16, %s109_s16, %s110_s17  }
  0x12   :  { %104 = dma.done.wait [#allocation3], 256  }
  0x13   :  { %105 = vsyncadd [#allocation3], 4294967040  ;;  %v23_v0 = vld [vmem:[#allocation2] sm:$0xff]  ;;  %v24_v1 = vld [vmem:[#allocation2 + $0x8] sm:$0xff]  ;;  %s111_s20 = smov [#allocation5]  }
  0x14   :  { %v25_v2 = vmul.f32 0.5, %v23_v0  ;;  %v26_v3 = vmul.f32 0.5, %v24_v1  ;;  %s40_s21 = sshll.u32 %s111_s20, 4  ;;  %s41_s21 = int_to_ptr.vmem [resolvable:$true] %s40_s21 }
  0x15   :  { %s82_s0 = scalar_lea.vmem %s41_s21, 256  ;;  %p87_p9 = scmp.lt.s32.totalorder %s41_s21, %s41_s21 }
  0x16   :  { %56 = vtanh.f32 %v25_v2  ;;  %p83_p8 = scmp.ne.s32.totalorder %s41_s21, %s82_s0  ;;  %p88_p10 = scmp.lt.s32.totalorder %s82_s0, %s82_s0 }
  0x17   :  { %58 = vtanh.f32 %v26_v3 }
  0x18   :  { %p89_p11 = por %p88_p10, %p87_p9 }
  0x1a   :  { %p90_p12 = pnand %p89_p11, %p83_p8 }
  0x20   :  { %v57_v4 = vpop.eup %56 }
  0x21   :  { %v59_v5 = vpop.eup %58  ;;  %v29_v6 = vmul.f32 0.499999, %v57_v4 }
  0x22   :  { %v30_v7 = vmul.f32 0.499999, %v59_v5 }
  0x23   :  { %v31_v8 = vadd.f32 0.5, %v29_v6 }
  0x24   :  { %v32_v9 = vadd.f32 0.5, %v30_v7 }
  0x25   :  { %33 = vst [vmem:[#allocation5] sm:$0xff] %v31_v8 }
  0x26   :  { %34 = vst [vmem:[#allocation5 + $0x8] sm:$0xff] %v32_v9 }
  0x27   :  { %93 = shalt.err (!%p90_p12)
}
  0x28   :  { %s94_s24 = scalar_lea.hbm %s153_s1, 256 }
  0x29   :  { %p95_p13 = scmp.ne.s32.totalorder %s153_s1, %s94_s24  ;;  %p98_p0 = scmp.lt.u32.totalorder %s94_s24, %s153_s1 }
  0x2b   :  { %p100_p1 = pnand %p98_p0, %p95_p13 }
  0x2d   :  { %103 = shalt.err (!%p100_p1)
}
  0x2e   :  { %46 = dma.vmem_to_hbm [thread:$0]  %s41_s21, 256, %s153_s1, [#allocation4], %s109_s16, %s109_s16, %s110_s17  }
  0x2f   :  { %106 = dma.done.wait [#allocation4], 256  }
  0x30   :  { %107 = vsyncadd [#allocation4], 4294967040 }
  0x31   :  { %50 = vsyncpa [#allocation3], 1 }
  0x32   :  { %51 = vsyncpa [#allocation4], 1 }

</bundles_post_ra>
